<compile_context>
chip_gen: v6e
topology: v6e:2x2x1
jax: 0.10.0
libtpu: 0.0.40
codegen_flags: <defaults>
</compile_context>

<pallas_src>
import functools

import jax
import jax.numpy as jnp
from jax import lax
from jax.experimental import pallas as pl
from jax.experimental.pallas import tpu as pltpu


def _round_up(x, m):
    return ((x + m - 1) // m) * m


def _softmax_last(x):
    m = jnp.max(x, axis=-1, keepdims=True)
    e = jnp.exp(x - m)
    return e / jnp.sum(e, axis=-1, keepdims=True)


def _gumbel_softmax_kernel(x_ref, w_ref, b_ref, g_ref,
                           logits_ref, prob_ref, y_ref,
                           *, temperature, hard):
    x = x_ref[...]                               # [T, F]  f32
    w = w_ref[...]                               # [F, C]  f32
    b = b_ref[...]                               # [1, C]  f32

    # Linear: logits = x @ W^T + b   (MXU, f32 accumulate).
    logits = jnp.dot(x, w, preferred_element_type=jnp.float32) + b
    logits_ref[...] = logits

    # prob = softmax(logits, dim=-1)
    prob_ref[...] = _softmax_last(logits)

    # gumbel_softmax_sample: y = softmax((logits + g) / T)
    noisy = logits + g_ref[...]

    if hard:
        # argmax(softmax((logits+g)/T)) == argmax(logits+g): skip the second
        # softmax entirely and emit the one-hot (first max wins, like torch).
        c = noisy.shape[-1]
        cols = lax.broadcasted_iota(jnp.int32, noisy.shape, 1)      # [T, C]
        row_max = jnp.max(noisy, axis=-1, keepdims=True)            # [T, 1]
        cand = jnp.where(noisy == row_max, cols, jnp.int32(c))      # ties -> first
        first = jnp.min(cand, axis=-1, keepdims=True)               # [T, 1]
        y_ref[...] = jnp.where(cols == first, jnp.float32(1.0),
                               jnp.float32(0.0))
    else:
        y_ref[...] = _softmax_last(noisy * jnp.float32(1.0 / temperature))


def gumbel_softmax_forward(x, weight, bias, key,
                           temperature=1.0, hard=False,
                           tile_n=4096, eps=1e-20):
    """Forward pass of GumbelSoftmax.

    x:      [..., f_dim] float input
    weight: [c_dim, f_dim]  (PyTorch nn.Linear layout)
    bias:   [c_dim]
    key:    jax PRNG key for the Gumbel noise
    returns (logits [N, c_dim], prob [N, c_dim], y.squeeze())
    """
    f_dim = x.shape[-1]
    c_dim = weight.shape[0]

    x2d = x.reshape(-1, f_dim).astype(jnp.float32)
    n = x2d.shape[0]

    # Pad rows only to a sublane multiple (8); grid covers the rest via cdiv.
    n_pad = _round_up(n, 8)
    if n_pad != n:
        x2d = jnp.pad(x2d, ((0, n_pad - n), (0, 0)))

    tile_n = max(8, min(_round_up(int(tile_n), 8), n_pad))
    grid_n = pl.cdiv(n_pad, tile_n)

    w_t = weight.T.astype(jnp.float32)                   # [f_dim, c_dim]
    b2 = bias.reshape(1, c_dim).astype(jnp.float32)      # [1, c_dim]

    # Gumbel noise, deterministic per key (torch.rand stream not reproducible).
    u = jax.random.uniform(key, (n_pad, c_dim), dtype=jnp.float32)
    g = -jnp.log(-jnp.log(u + eps) + eps)

    kernel = functools.partial(_gumbel_softmax_kernel,
                               temperature=float(temperature), hard=bool(hard))

    out_shapes = tuple(jax.ShapeDtypeStruct((n_pad, c_dim), jnp.float32)
                       for _ in range(3))

    logits_p, prob_p, y_p = pl.pallas_call(
        kernel,
        out_shape=out_shapes,
        grid=(grid_n,),
        in_specs=[
            pl.BlockSpec((tile_n, f_dim), lambda i: (i, 0)),   # x tile
            pl.BlockSpec((f_dim, c_dim), lambda i: (0, 0)),    # W pinned in VMEM
            pl.BlockSpec((1, c_dim),     lambda i: (0, 0)),    # b pinned in VMEM
            pl.BlockSpec((tile_n, c_dim), lambda i: (i, 0)),   # gumbel noise tile
        ],
        out_specs=[
            pl.BlockSpec((tile_n, c_dim), lambda i: (i, 0)),   # logits
            pl.BlockSpec((tile_n, c_dim), lambda i: (i, 0)),   # prob
            pl.BlockSpec((tile_n, c_dim), lambda i: (i, 0)),   # y
        ],
        compiler_params=pltpu.CompilerParams(
            dimension_semantics=("parallel",),     # megacore-shardable on v7x
            vmem_limit_bytes=32 * 1024 * 1024,     # plenty of headroom
        ),
    )(x2d, w_t, b2, g)

    logits = logits_p[:n]
    prob = prob_p[:n]
    y = y_p[:n]

    # torch: return (logits, prob, y.squeeze())
    return logits, prob, jnp.squeeze(y)


if __name__ == "__main__":
    f_dim, c_dim = 32, 8
    batch, seq = 2, 8
    n = batch * seq

    key = jax.random.PRNGKey(0)
    kx, kw, kb, kn1, kn2 = jax.random.split(key, 5)

    # Deterministic nn.Linear-style init: U(-1/sqrt(f_dim), 1/sqrt(f_dim))
    bound = 1.0 / (f_dim ** 0.5)
    weight = jax.random.uniform(kw, (c_dim, f_dim), minval=-bound, maxval=bound,
                                dtype=jnp.float32)
    bias = jax.random.uniform(kb, (c_dim,), minval=-bound, maxval=bound,
                              dtype=jnp.float32)

    x = jax.random.normal(kx, (batch, seq, f_dim), dtype=jnp.float32)

    # ---- soft (hard=False) path ----
    logits, prob, y = gumbel_softmax_forward(x, weight, bias, kn1,
                                             temperature=1.0, hard=False)
    jax.block_until_ready((logits, prob, y))

    assert logits.shape == (n, c_dim)
    assert prob.shape == (n, c_dim)
    assert y.shape == (n, c_dim)

    # Reference (pure JAX) for linear + softmax and the noisy softmax.
    ref_logits = x.reshape(-1, f_dim) @ weight.T + bias
    ref_prob = jax.nn.softmax(ref_logits, axis=-1)
    eps = 1e-20
    u_ref = jax.random.uniform(kn1, (n, c_dim), dtype=jnp.float32)
    g_ref = -jnp.log(-jnp.log(u_ref + eps) + eps)
    ref_y = jax.nn.softmax(ref_logits + g_ref, axis=-1)

    assert jnp.allclose(logits, ref_logits, atol=1e-3, rtol=1e-3)
    assert jnp.allclose(prob, ref_prob, atol=1e-3, rtol=1e-3)
    assert jnp.allclose(y, ref_y, atol=1e-3, rtol=1e-3)
    assert jnp.allclose(jnp.sum(prob, axis=-1), 1.0, atol=1e-4)
    assert jnp.allclose(jnp.sum(y, axis=-1), 1.0, atol=1e-4)

    # ---- hard=True path: strict one-hot forward value ----
    _, _, y_hard = gumbel_softmax_forward(x, weight, bias, kn2,
                                          temperature=1.0, hard=True)
    jax.block_until_ready(y_hard)
    assert jnp.allclose(jnp.sum(y_hard, axis=-1), 1.0)
    assert bool(jnp.all((y_hard == 0.0) | (y_hard == 1.0)))

    u_ref2 = jax.random.uniform(kn2, (n, c_dim), dtype=jnp.float32)
    g_ref2 = -jnp.log(-jnp.log(u_ref2 + eps) + eps)
    ref_idx = jnp.argmax(ref_logits + g_ref2, axis=-1)
    assert bool(jnp.all(jnp.argmax(y_hard, axis=-1) == ref_idx))

    print("KERNEL_OK")
</pallas_src>

<mosaic_0001>
module attributes {stable_mosaic.version = 11 : i64} {
  func.func @_gumbel_softmax_kernel(%arg0: i32, %arg1: memref<16x32xf32, #tpu.memory_space<vmem>>, %arg2: memref<32x8xf32, #tpu.memory_space<vmem>>, %arg3: memref<1x8xf32, #tpu.memory_space<vmem>>, %arg4: memref<16x8xf32, #tpu.memory_space<vmem>>, %arg5: memref<16x8xf32, #tpu.memory_space<vmem>>, %arg6: memref<16x8xf32, #tpu.memory_space<vmem>>, %arg7: memref<16x8xf32, #tpu.memory_space<vmem>>) attributes {dimension_semantics = [#tpu.dimension_semantics<parallel>], iteration_bounds = array<i64: 1>, scalar_prefetch = 0 : i64, scratch_operands = 0 : i64, tpu.core_type = #tpu.core_type<tc>, window_params = [{transform_indices = @transform_0, window_bounds = array<i64: 16, 32>}, {pipeline_mode = #tpu.pipeline_mode<synchronous>, transform_indices = @transform_1, window_bounds = array<i64: 32, 8>}, {pipeline_mode = #tpu.pipeline_mode<synchronous>, transform_indices = @transform_2, window_bounds = array<i64: 1, 8>}, {transform_indices = @transform_3, window_bounds = array<i64: 16, 8>}, {transform_indices = @transform_4, window_bounds = array<i64: 16, 8>}, {transform_indices = @transform_5, window_bounds = array<i64: 16, 8>}, {transform_indices = @transform_6, window_bounds = array<i64: 16, 8>}]} {
    %c0 = arith.constant 0 : index
    %c0_0 = arith.constant 0 : index
    %0 = vector.load %arg1[%c0, %c0_0] : memref<16x32xf32, #tpu.memory_space<vmem>>, vector<16x32xf32>
    %c0_1 = arith.constant 0 : index
    %c0_2 = arith.constant 0 : index
    %1 = vector.load %arg2[%c0_1, %c0_2] : memref<32x8xf32, #tpu.memory_space<vmem>>, vector<32x8xf32>
    %c0_3 = arith.constant 0 : index
    %c0_4 = arith.constant 0 : index
    %2 = vector.load %arg3[%c0_3, %c0_4] : memref<1x8xf32, #tpu.memory_space<vmem>>, vector<1x8xf32>
    %cst = arith.constant dense<0.000000e+00> : vector<16x8xf32>
    %3 = tpu.matmul %0, %1, %cst {dimension_numbers = #tpu.dot_dimension_numbers<[1], [0], [0], [1], [0, 0, 1, 1], [], []>} : vector<16x32xf32>, vector<32x8xf32>, vector<16x8xf32> -> vector<16x8xf32>
    %4 = vector.broadcast %2 : vector<1x8xf32> to vector<16x8xf32>
    %5 = arith.addf %3, %4 : vector<16x8xf32>
    %c0_5 = arith.constant 0 : index
    %c0_6 = arith.constant 0 : index
    %6 = vector.load %arg5[%c0_5, %c0_6] : memref<16x8xf32, #tpu.memory_space<vmem>>, vector<16x8xf32>
    tpu.vector_store %arg5[%c0_5, %c0_6], %5 {strides = array<i32>} : memref<16x8xf32, #tpu.memory_space<vmem>>, vector<16x8xf32>,
    %cst_7 = arith.constant dense<0xFF800000> : vector<16xf32>
    %7 = vector.multi_reduction <maximumf>, %5, %cst_7 [1] : vector<16x8xf32> to vector<16xf32>
    %8 = vector.shape_cast %7 : vector<16xf32> to vector<16x1xf32>
    %9 = vector.broadcast %8 : vector<16x1xf32> to vector<16x8xf32>
    %10 = arith.subf %5, %9 : vector<16x8xf32>
    %11 = math.exp %10 : vector<16x8xf32>
    %cst_8 = arith.constant dense<0.000000e+00> : vector<16xf32>
    %12 = vector.multi_reduction <add>, %11, %cst_8 [1] : vector<16x8xf32> to vector<16xf32>
    %13 = vector.shape_cast %12 : vector<16xf32> to vector<16x1xf32>
    %14 = vector.broadcast %13 : vector<16x1xf32> to vector<16x8xf32>
    %15 = arith.divf %11, %14 : vector<16x8xf32>
    %c0_9 = arith.constant 0 : index
    %c0_10 = arith.constant 0 : index
    %16 = vector.load %arg6[%c0_9, %c0_10] : memref<16x8xf32, #tpu.memory_space<vmem>>, vector<16x8xf32>
    tpu.vector_store %arg6[%c0_9, %c0_10], %15 {strides = array<i32>} : memref<16x8xf32, #tpu.memory_space<vmem>>, vector<16x8xf32>,
    %c0_11 = arith.constant 0 : index
    %c0_12 = arith.constant 0 : index
    %17 = vector.load %arg4[%c0_11, %c0_12] : memref<16x8xf32, #tpu.memory_space<vmem>>, vector<16x8xf32>
    %18 = arith.addf %5, %17 : vector<16x8xf32>
    %cst_13 = arith.constant 1.000000e+00 : f32
    %19 = vector.broadcast %cst_13 : f32 to vector<16x8xf32>
    %20 = arith.mulf %18, %19 : vector<16x8xf32>
    %cst_14 = arith.constant dense<0xFF800000> : vector<16xf32>
    %21 = vector.multi_reduction <maximumf>, %20, %cst_14 [1] : vector<16x8xf32> to vector<16xf32>
    %22 = vector.shape_cast %21 : vector<16xf32> to vector<16x1xf32>
    %23 = vector.broadcast %22 : vector<16x1xf32> to vector<16x8xf32>
    %24 = arith.subf %20, %23 : vector<16x8xf32>
    %25 = math.exp %24 : vector<16x8xf32>
    %cst_15 = arith.constant dense<0.000000e+00> : vector<16xf32>
    %26 = vector.multi_reduction <add>, %25, %cst_15 [1] : vector<16x8xf32> to vector<16xf32>
    %27 = vector.shape_cast %26 : vector<16xf32> to vector<16x1xf32>
    %28 = vector.broadcast %27 : vector<16x1xf32> to vector<16x8xf32>
    %29 = arith.divf %25, %28 : vector<16x8xf32>
    %c0_16 = arith.constant 0 : index
    %c0_17 = arith.constant 0 : index
    %30 = vector.load %arg7[%c0_16, %c0_17] : memref<16x8xf32, #tpu.memory_space<vmem>>, vector<16x8xf32>
    tpu.vector_store %arg7[%c0_16, %c0_17], %29 {strides = array<i32>} : memref<16x8xf32, #tpu.memory_space<vmem>>, vector<16x8xf32>,
    return
  }
  func.func @transform_0(%arg0: i32) -> (i32, i32) {
    %c0_i32 = arith.constant 0 : i32
    %c0_i32_0 = arith.constant 0 : i32
    return %arg0, %c0_i32 : i32, i32
  }
  func.func @transform_1(%arg0: i32) -> (i32, i32) {
    %c0_i32 = arith.constant 0 : i32
    %c0_i32_0 = arith.constant 0 : i32
    %c0_i32_1 = arith.constant 0 : i32
    return %c0_i32, %c0_i32_0 : i32, i32
  }
  func.func @transform_2(%arg0: i32) -> (i32, i32) {
    %c0_i32 = arith.constant 0 : i32
    %c0_i32_0 = arith.constant 0 : i32
    %c0_i32_1 = arith.constant 0 : i32
    return %c0_i32, %c0_i32_0 : i32, i32
  }
  func.func @transform_3(%arg0: i32) -> (i32, i32) {
    %c0_i32 = arith.constant 0 : i32
    %c0_i32_0 = arith.constant 0 : i32
    return %arg0, %c0_i32 : i32, i32
  }
  func.func @transform_4(%arg0: i32) -> (i32, i32) {
    %c0_i32 = arith.constant 0 : i32
    %c0_i32_0 = arith.constant 0 : i32
    return %arg0, %c0_i32 : i32, i32
  }
  func.func @transform_5(%arg0: i32) -> (i32, i32) {
    %c0_i32 = arith.constant 0 : i32
    %c0_i32_0 = arith.constant 0 : i32
    return %arg0, %c0_i32 : i32, i32
  }
  func.func @transform_6(%arg0: i32) -> (i32, i32) {
    %c0_i32 = arith.constant 0 : i32
    %c0_i32_0 = arith.constant 0 : i32
    return %arg0, %c0_i32 : i32, i32
  }
}

</mosaic_0001>

<bundles_post_ra>
// kernel: tpu_custom_call.1
= control target key start
LH: loop header
LB: loop body
LE: loop exit
PB: predicated region body
PF: predicated region fallthrough
CT: control target
= control target key end

     0   :  { %vm33_vm0 = vcmask 261120   ;;  %vm115_vm1 = vcmask 64512   ;;  %s314_s1 = inlined_call_operand.vmem [shape: f32[32,8], index: 1, kind: input, shape index: {}]   ;;  %s315_s0 = inlined_call_operand.vmem [shape: f32[16,32], index: 0, kind: input, shape index: {}]   ;;  %s316_s2 = inlined_call_operand.vmem [shape: f32[1,8], index: 2, kind: input, shape index: {}]   ;;  %s317_s4 = inlined_call_operand.vmem [shape: f32[16,8], index: 4, kind: output, shape index: {0}]   ;;  %s318_s3 = inlined_call_operand.vmem [shape: f32[16,8], index: 3, kind: input, shape index: {}]   ;;  %s319_s5 = inlined_call_operand.vmem [shape: f32[16,8], index: 5, kind: output, shape index: {1}]   ;;  %s320_s6 = inlined_call_operand.vmem [shape: f32[16,8], index: 6, kind: output, shape index: {2}]  }
   0x1   :  { %v25_v0 = vld [vmem:[%s314_s1 + $0x18] sm:$0xff]  ;;  %v24_v1 = vld [vmem:[%s314_s1 + $0x10] sm:$0xff]  ;;  %v20_v2 = vld [vmem:[%s315_s0] sm:$0xff] }
   0x2   :  { %191 = vmatprep.subr.mxu0 %v25_v0  ;;  %v23_v3 = vld [vmem:[%s314_s1 + $0x8] sm:$0xff]  ;;  %199 = vmatprep.mubr.msk.f32.mxu0 %vm33_vm0, %v20_v2  ;;  %v22_v4 = vld [vmem:[%s314_s1] sm:$0xff] }
   0x3   :  { %192 = vmatpush3.msra.mxu0 %v25_v0  ;;  %v21_v5 = vld [vmem:[%s315_s0 + $0x8] sm:$0xff]  ;;  %v182_v6 = vld [vmem:[%s316_s2] ss:$0 sm:$0xff] }
   0x4   :  { %193 = vmatprep.subr.mxu0 %v24_v1  ;;  %v142_v10 = vld [vmem:[%s318_s3] sm:$0xff]  ;;  %v143_v12 = vld [vmem:[%s318_s3 + $0x8] sm:$0xff] }
   0x5   :  { %194 = vmatpush3.msra.mxu0 %v24_v1 }
   0x6   :  { %195 = vmatprep.subr.mxu0 %v23_v3 }
   0x7   :  { %196 = vmatpush3.msra.mxu0 %v23_v3 }
   0x8   :  { %197 = vmatprep.subr.mxu0 %v22_v4 }
   0x9   :  { %198 = vmatpush3.msra.mxu0 %v22_v4 }
   0xa   :  { %200 = vmatmul.mubr.msk.f32.vlgmr.msra.gmra.mxu0 %vm33_vm0, %v21_v5 }
  0xca   :  { %v201_v7 = vpop.f32.mrf.mxu0 }
  0xcb   :  { %v112_v8 = vadd.f32 %v201_v7, %v182_v6 }
  0xcc   :  { %v106_v9 = vpop.f32.mrf.mxu0 }
  0xcd   :  { %117 = vst.msk [vmem:[%s317_s4 + $0x8] sm:$0xff] %vm115_vm1, %v112_v8  ;;  %v107_v11 = vadd.f32 %v182_v6, %v106_v9  ;;  %v145_v16 = vadd.f32 %v143_v12, %v112_v8  ;;  %v121_v17 = vsel %vm115_vm1, %v112_v8, -inf }
  0xcf   :  { %116 = vst.msk [vmem:[%s317_s4] sm:$0xff] %vm115_vm1, %v107_v11  ;;  %v118_v13 = vsel %vm115_vm1, %v107_v11, -inf  ;;  %v144_v14 = vadd.f32 %v142_v10, %v107_v11  ;;  %v149_v18 = vsel %vm115_vm1, %v145_v16, -inf }
  0xd0   :  { %119 = vmax.xlane.f32.xlu0 %v118_v13 }
  0xd1   :  { %v146_v15 = vsel %vm115_vm1, %v144_v14, -inf }
  0xd2   :  { %147 = vmax.xlane.f32.xlu1 %v146_v15 }
  0xd4   :  { %122 = vmax.xlane.f32.xlu0 %v121_v17 }
  0xd6   :  { %150 = vmax.xlane.f32.xlu1 %v149_v18 }
 0x159   :  { %v120_v19 = vpop.xlane.xlu0 %119 }
 0x15a   :  { %v124_v20 = vsub.f32 %v107_v11, %v120_v19 }
 0x15b   :  { %v148_v21 = vpop.xlane.xlu1 %147 }
 0x15c   :  { %v126_v22 = vmul.f32 1.442695, %v124_v20  ;;  %v152_v23 = vsub.f32 %v144_v14, %v148_v21 }
 0x15d   :  { %v123_v24 = vpop.xlane.xlu0 %122 }
 0x15e   :  { %202 = vpow2.f32 %v126_v22  ;;  %v154_v25 = vmul.f32 1.442695, %v152_v23  ;;  %v125_v26 = vsub.f32 %v112_v8, %v123_v24 }
 0x15f   :  { %v151_v27 = vpop.xlane.xlu1 %150 }
 0x160   :  { %204 = vpow2.f32 %v154_v25  ;;  %v128_v28 = vmul.f32 1.442695, %v125_v26  ;;  %v153_v29 = vsub.f32 %v145_v16, %v151_v27 }
 0x162   :  { %206 = vpow2.f32 %v128_v28  ;;  %v156_v30 = vmul.f32 1.442695, %v153_v29 }
 0x164   :  { %208 = vpow2.f32 %v156_v30 }
 0x16b   :  { %v203_v31 = vpop.eup %202 }
 0x16c   :  { %v130_v32 = vsel %vm115_vm1, %v203_v31, 0.0 }
 0x16d   :  { %v205_v33 = vpop.eup %204  ;;  %131 = vadd.xlane.f32.xlu0 %v130_v32 }
 0x16e   :  { %v158_v35 = vsel %vm115_vm1, %v205_v33, 0.0 }
 0x16f   :  { %v207_v34 = vpop.eup %206 }
 0x170   :  { %v133_v36 = vsel %vm115_vm1, %v207_v34, 0.0 }
 0x171   :  { %v209_v37 = vpop.eup %208  ;;  %159 = vadd.xlane.f32.xlu0 %v158_v35  ;;  %134 = vadd.xlane.f32.xlu1 %v133_v36 }
 0x172   :  { %v161_v38 = vsel %vm115_vm1, %v209_v37, 0.0 }
 0x175   :  { %162 = vadd.xlane.f32.xlu1 %v161_v38 }
 0x1f6   :  { %v132_v39 = vpop.xlane.xlu0 %131 }
 0x1f7   :  { %210 = vrcp.f32 %v132_v39 }
 0x1fa   :  { %v135_v40 = vpop.xlane.xlu1 %134  ;;  %v160_v41 = vpop.xlane.xlu0 %159 }
 0x1fb   :  { %212 = vrcp.f32 %v135_v40 }
 0x1fc   :  { %214 = vrcp.f32 %v160_v41 }
 0x1fe   :  { %v163_v42 = vpop.xlane.xlu1 %162 }
 0x1ff   :  { %216 = vrcp.f32 %v163_v42 }
 0x204   :  { %v211_v43 = vpop.eup %210 }
 0x205   :  { %v137_v44 = vmul.f32 %v211_v43, %v203_v31 }
 0x207   :  { %140 = vst.msk [vmem:[%s319_s5] sm:$0xff] %vm115_vm1, %v137_v44 }
 0x208   :  { %v213_v45 = vpop.eup %212 }
 0x209   :  { %v215_v46 = vpop.eup %214  ;;  %v139_v47 = vmul.f32 %v213_v45, %v207_v34 }
 0x20a   :  { %v165_v48 = vmul.f32 %v215_v46, %v205_v33 }
 0x20b   :  { %141 = vst.msk [vmem:[%s319_s5 + $0x8] sm:$0xff] %vm115_vm1, %v139_v47 }
 0x20c   :  { %v217_v49 = vpop.eup %216  ;;  %168 = vst.msk [vmem:[%s320_s6] sm:$0xff] %vm115_vm1, %v165_v48 }
 0x20d   :  { %v167_v50 = vmul.f32 %v217_v49, %v209_v37 }
 0x20f   :  { %169 = vst.msk [vmem:[%s320_s6 + $0x8] sm:$0xff] %vm115_vm1, %v167_v50 }

</bundles_post_ra>
